<compile_context>
chip_gen: v6e
topology: v6e:2x2x1
jax: 0.10.0
libtpu: 0.0.40
codegen_flags: <defaults>
</compile_context>

<pallas_src>
import functools

import jax
import jax.numpy as jnp
from jax import lax
from jax.experimental import pallas as pl
from jax.experimental.pallas import tpu as pltpu

_EPS = 1e-8  # matches torch.nn.CosineSimilarity default eps

# Conservative per-kernel tile budget (fits v5e's 16 MiB scoped default with
# headroom) and an explicit scoped-VMEM limit that is safe on v5e/v6e/v7x.
_TILE_VMEM_BUDGET = 12 * 1024 * 1024
_VMEM_LIMIT = 32 * 1024 * 1024


def _round_up(a, b):
    return (a + b - 1) // b * b


# --------------------------------------------------------------------------
# Kernels
# --------------------------------------------------------------------------
def _normalize_kernel(x_ref, o_ref):
    """Row-normalize a (TR, H) tile: x / max(||x||, eps)."""
    x = x_ref[...].astype(jnp.float32)
    sq = jnp.sum(x * x, axis=-1, keepdims=True)          # (TR, 1)
    inv_norm = lax.rsqrt(jnp.maximum(sq, _EPS * _EPS))    # 1 / max(||x||, eps)
    o_ref[...] = (x * inv_norm).astype(o_ref.dtype)


def _scaled_matmul_kernel(x_ref, y_ref, o_ref, acc_ref, *, inv_temp):
    """Tiled (Xn @ YnT) * inv_temp with f32 accumulator, K axis last."""
    k = pl.program_id(2)

    @pl.when(k == 0)
    def _():
        acc_ref[...] = jnp.zeros_like(acc_ref)

    acc_ref[...] += jnp.dot(x_ref[...], y_ref[...],
                            preferred_element_type=jnp.float32)

    @pl.when(k == pl.num_programs(2) - 1)
    def _():
        o_ref[...] = (acc_ref[...] * inv_temp).astype(o_ref.dtype)


def _cos_sim_kernel(x_ref, y_ref, o_ref, dot_acc, sqx_acc, sqy_acc, *, inv_temp):
    """Elementwise (row-wise) cosine similarity with K-tiled feature axis."""
    k = pl.program_id(1)

    @pl.when(k == 0)
    def _():
        dot_acc[...] = jnp.zeros_like(dot_acc)
        sqx_acc[...] = jnp.zeros_like(sqx_acc)
        sqy_acc[...] = jnp.zeros_like(sqy_acc)

    x = x_ref[...].astype(jnp.float32)
    y = y_ref[...].astype(jnp.float32)
    dot_acc[...] += jnp.sum(x * y, axis=-1, keepdims=True)
    sqx_acc[...] += jnp.sum(x * x, axis=-1, keepdims=True)
    sqy_acc[...] += jnp.sum(y * y, axis=-1, keepdims=True)

    @pl.when(k == pl.num_programs(1) - 1)
    def _():
        # sqrt+div replaced with a single rsqrt (EUP slot) * mul chain.
        inv_denom = lax.rsqrt(jnp.maximum(sqx_acc[...] * sqy_acc[...],
                                          _EPS * _EPS))
        o_ref[...] = (dot_acc[...] * inv_denom * inv_temp).astype(o_ref.dtype)


# --------------------------------------------------------------------------
# Wrappers
# --------------------------------------------------------------------------
def _normalize_rows(x):
    """Row-normalize a 2-D (N, H) array with a tiled Pallas kernel -> f32."""
    n, h = x.shape
    itemsize = jnp.dtype(x.dtype).itemsize
    # (input + f32 output) x 2 pipeline buffers per row.
    per_row = h * (itemsize + 4) * 2
    tr = _TILE_VMEM_BUDGET // max(per_row, 1)
    tr = max(8, min(1024, (tr // 8) * 8))
    tr = min(tr, _round_up(n, 8))
    n_pad = _round_up(n, tr)
    xp = jnp.pad(x, ((0, n_pad - n), (0, 0))) if n_pad != n else x

    out = pl.pallas_call(
        _normalize_kernel,
        out_shape=jax.ShapeDtypeStruct((n_pad, h), jnp.float32),
        grid_spec=pltpu.PrefetchScalarGridSpec(
            num_scalar_prefetch=0,
            grid=(n_pad // tr,),
            in_specs=[pl.BlockSpec((tr, h), lambda i: (i, 0))],
            out_specs=pl.BlockSpec((tr, h), lambda i: (i, 0)),
        ),
        compiler_params=pltpu.CompilerParams(
            dimension_semantics=("parallel",),
            vmem_limit_bytes=_VMEM_LIMIT,
        ),
    )(xp)
    return out[:n] if n_pad != n else out


def _pairwise_similarity(xm, ym, inv_temp, out_dtype):
    """cos_sim(x[:,None,:], y[None,:,:]) / temp as normalize + MXU matmul."""
    bx, h = xm.shape
    by = ym.shape[0]

    xn = _normalize_rows(xm)  # (bx, h) f32, unit rows (zero rows stay zero)
    yn = _normalize_rows(ym)  # (by, h) f32

    # MXU tiling: row axes parallel, contraction (feature) axis last, K-tiled
    # so the row tiles stay large independent of H (v7x's 64 MiB VMEM cap).
    tm = min(256, _round_up(bx, 8))
    tn = min(256, _round_up(by, 8))
    tk = h if h <= 2048 else 512
    h_pad = _round_up(h, tk)
    bx_pad = _round_up(bx, tm)
    by_pad = _round_up(by, tn)

    if bx_pad != bx or h_pad != h:
        xn = jnp.pad(xn, ((0, bx_pad - bx), (0, h_pad - h)))
    if by_pad != by or h_pad != h:
        yn = jnp.pad(yn, ((0, by_pad - by), (0, h_pad - h)))
    ynt = yn.T  # (h_pad, by_pad): canonical A @ B layout for the MXU

    kernel = functools.partial(_scaled_matmul_kernel, inv_temp=inv_temp)
    out = pl.pallas_call(
        kernel,
        out_shape=jax.ShapeDtypeStruct((bx_pad, by_pad), out_dtype),
        grid_spec=pltpu.PrefetchScalarGridSpec(
            num_scalar_prefetch=0,
            grid=(bx_pad // tm, by_pad // tn, h_pad // tk),
            in_specs=[
                pl.BlockSpec((tm, tk), lambda i, j, k: (i, k)),
                pl.BlockSpec((tk, tn), lambda i, j, k: (k, j)),
            ],
            out_specs=pl.BlockSpec((tm, tn), lambda i, j, k: (i, j)),
            scratch_shapes=[pltpu.VMEM((tm, tn), jnp.float32)],
        ),
        compiler_params=pltpu.CompilerParams(
            dimension_semantics=("parallel", "parallel", "arbitrary"),
            vmem_limit_bytes=_VMEM_LIMIT,
        ),
    )(xn, ynt)

    if bx_pad != bx or by_pad != by:
        out = out[:bx, :by]
    return out


def _elementwise_similarity(x, y, inv_temp, out_dtype):
    """General broadcast fallback: per-row cosine similarity / temp."""
    xb, yb = jnp.broadcast_arrays(x, y)
    batch_shape = xb.shape[:-1]
    h = xb.shape[-1]
    xf = xb.reshape(-1, h)
    yf = yb.reshape(-1, h)
    n = xf.shape[0]

    # Feature (reduction) axis tiling: untiled for moderate H, 512-wide chunks
    # for large H so the row tile stays big on every generation.
    tk = h if h <= 2048 else 512
    h_pad = _round_up(h, tk)

    # Row tile: as large as the VMEM budget allows (2 inputs x 2 buffers).
    per_row = tk * (jnp.dtype(xf.dtype).itemsize
                    + jnp.dtype(yf.dtype).itemsize) * 2
    tm = _TILE_VMEM_BUDGET // max(per_row, 1)
    tm = max(8, min(1024, (tm // 8) * 8))
    tm = min(tm, _round_up(n, 8))
    n_pad = _round_up(n, tm)

    if n_pad != n or h_pad != h:
        xf = jnp.pad(xf, ((0, n_pad - n), (0, h_pad - h)))
        yf = jnp.pad(yf, ((0, n_pad - n), (0, h_pad - h)))

    # TODO(synk): output is (tm, 1) blocks (masked single-lane stores); output
    # bytes are H x smaller than inputs so this is a few-% effect at most.
    kernel = functools.partial(_cos_sim_kernel, inv_temp=inv_temp)
    out = pl.pallas_call(
        kernel,
        out_shape=jax.ShapeDtypeStruct((n_pad, 1), out_dtype),
        grid_spec=pltpu.PrefetchScalarGridSpec(
            num_scalar_prefetch=0,
            grid=(n_pad // tm, h_pad // tk),
            in_specs=[
                pl.BlockSpec((tm, tk), lambda i, k: (i, k)),
                pl.BlockSpec((tm, tk), lambda i, k: (i, k)),
            ],
            out_specs=pl.BlockSpec((tm, 1), lambda i, k: (i, 0)),
            scratch_shapes=[pltpu.VMEM((tm, 1), jnp.float32)] * 3,
        ),
        compiler_params=pltpu.CompilerParams(
            dimension_semantics=("parallel", "arbitrary"),
            vmem_limit_bytes=_VMEM_LIMIT,
        ),
    )(xf, yf)

    return out[:n, 0].reshape(batch_shape)


def similarity(x, y, temp):
    """Pallas equivalent of Similarity(temp)(x, y) = cos_sim(x, y, dim=-1)/temp."""
    inv_temp = 1.0 / float(temp)
    out_dtype = jnp.promote_types(x.dtype, y.dtype)

    # Fast path: the contrastive outer-product pattern
    # sim(z1.unsqueeze(1), z2.unsqueeze(0)) -> (Bx, By).
    if (x.ndim == 3 and y.ndim == 3
            and x.shape[1] == 1 and y.shape[0] == 1
            and x.shape[-1] == y.shape[-1]):
        return _pairwise_similarity(x[:, 0, :], y[0, :, :], inv_temp, out_dtype)

    return _elementwise_similarity(x, y, inv_temp, out_dtype)


# --------------------------------------------------------------------------
# Reference + test
# --------------------------------------------------------------------------
def _reference(x, y, temp):
    xb, yb = jnp.broadcast_arrays(x.astype(jnp.float32), y.astype(jnp.float32))
    dot = jnp.sum(xb * yb, axis=-1)
    nx = jnp.sqrt(jnp.sum(xb * xb, axis=-1))
    ny = jnp.sqrt(jnp.sum(yb * yb, axis=-1))
    return dot / jnp.maximum(nx * ny, _EPS) / temp


if __name__ == "__main__":
    key = jax.random.PRNGKey(0)
    kx, ky, ka, kb = jax.random.split(key, 4)

    B, H = 8, 32
    temp = 0.05  # typical SimCSE temperature

    # Pairwise (MXU matmul) path: sim(z1.unsqueeze(1), z2.unsqueeze(0)) -> (B, B)
    x = jax.random.normal(kx, (B, 1, H), dtype=jnp.float32)
    y = jax.random.normal(ky, (1, B, H), dtype=jnp.float32)
    out = jax.block_until_ready(similarity(x, y, temp))
    ref = _reference(x, y, temp)
    assert out.shape == (B, B), out.shape
    # Tolerance leaves headroom for MXU default-precision f32 matmul passes.
    assert jnp.allclose(out, ref, atol=1e-2, rtol=2e-3), (
        float(jnp.max(jnp.abs(out - ref)))
    )

    # Elementwise broadcast fallback path: same-shape inputs -> (2, B)
    a = jax.random.normal(ka, (2, B, H), dtype=jnp.float32)
    b = jax.random.normal(kb, (2, B, H), dtype=jnp.float32)
    out2 = jax.block_until_ready(similarity(a, b, temp))
    ref2 = _reference(a, b, temp)
    assert out2.shape == (2, B), out2.shape
    assert jnp.allclose(out2, ref2, atol=1e-4, rtol=1e-4), (
        float(jnp.max(jnp.abs(out2 - ref2)))
    )

    print("KERNEL_OK")
</pallas_src>

<mosaic_0001>
module attributes {stable_mosaic.version = 11 : i64} {
  func.func @_normalize_kernel(%arg0: i32, %arg1: memref<8x32xf32, #tpu.memory_space<vmem>>, %arg2: memref<8x32xf32, #tpu.memory_space<vmem>>) attributes {dimension_semantics = [#tpu.dimension_semantics<parallel>], iteration_bounds = array<i64: 1>, scalar_prefetch = 0 : i64, scratch_operands = 0 : i64, tpu.core_type = #tpu.core_type<tc>, window_params = [{transform_indices = @transform_0, window_bounds = array<i64: 8, 32>}, {transform_indices = @transform_1, window_bounds = array<i64: 8, 32>}]} {
    %c0 = arith.constant 0 : index
    %c0_0 = arith.constant 0 : index
    %0 = vector.load %arg1[%c0, %c0_0] : memref<8x32xf32, #tpu.memory_space<vmem>>, vector<8x32xf32>
    %1 = arith.mulf %0, %0 : vector<8x32xf32>
    %cst = arith.constant dense<0.000000e+00> : vector<8xf32>
    %2 = vector.multi_reduction <add>, %1, %cst [1] : vector<8x32xf32> to vector<8xf32>
    %3 = vector.shape_cast %2 : vector<8xf32> to vector<8x1xf32>
    %cst_1 = arith.constant 1.000000e-16 : f32
    %4 = vector.broadcast %cst_1 : f32 to vector<8x1xf32>
    %5 = arith.maximumf %3, %4 : vector<8x1xf32>
    %6 = math.rsqrt %5 : vector<8x1xf32>
    %7 = vector.broadcast %6 : vector<8x1xf32> to vector<8x32xf32>
    %8 = arith.mulf %0, %7 : vector<8x32xf32>
    %c0_2 = arith.constant 0 : index
    %c0_3 = arith.constant 0 : index
    %9 = vector.load %arg2[%c0_2, %c0_3] : memref<8x32xf32, #tpu.memory_space<vmem>>, vector<8x32xf32>
    tpu.vector_store %arg2[%c0_2, %c0_3], %8 {strides = array<i32>} : memref<8x32xf32, #tpu.memory_space<vmem>>, vector<8x32xf32>,
    return
  }
  func.func @transform_0(%arg0: i32) -> (i32, i32) {
    %c0_i32 = arith.constant 0 : i32
    %c0_i32_0 = arith.constant 0 : i32
    return %arg0, %c0_i32 : i32, i32
  }
  func.func @transform_1(%arg0: i32) -> (i32, i32) {
    %c0_i32 = arith.constant 0 : i32
    %c0_i32_0 = arith.constant 0 : i32
    return %arg0, %c0_i32 : i32, i32
  }
}

</mosaic_0001>

<bundles_post_ra>
// kernel: tpu_custom_call.1
= control target key start
LH: loop header
LB: loop body
LE: loop exit
PB: predicated region body
PF: predicated region fallthrough
CT: control target
= control target key end

     0   :  { %6 = vsyncpa [#allocation3], 0  ;;  %s112_s0 = inlined_call_operand.hbm [shape: f32[8,32], index: 0, kind: input, shape index: {}]   ;;  %s113_s1 = inlined_call_operand.hbm [shape: f32[8,32], index: 1, kind: output, shape index: {}]  }
   0x1   :  { %7 = vsyncpa [#allocation4], 0  ;;  %s94_s6 = smov [#allocation2]  }
   0x2   :  { %s14_s7 = sshll.u32 %s94_s6, 4  ;;  %s15_s7 = int_to_ptr.vmem [resolvable:$true] %s14_s7 }
   0x3   :  { %s58_s8 = scalar_lea.vmem %s15_s7, 128  ;;  %p63_p1 = scmp.lt.s32.totalorder %s15_s7, %s15_s7 }
   0x4   :  { %p59_p0 = scmp.ne.s32.totalorder %s15_s7, %s58_s8  ;;  %p64_p2 = scmp.lt.s32.totalorder %s58_s8, %s58_s8 }
   0x6   :  { %p65_p3 = por %p64_p2, %p63_p1 }
   0x8   :  { %p66_p4 = pnand %p65_p3, %p59_p0 }
   0xa   :  { %69 = shalt.err (!%p66_p4)
}
   0xb   :  { %17 = dma.hbm_to_vmem [thread:$0]  %s112_s0, 128, %s15_s7, [#allocation3]  }
   0xc   :  { %90 = dma.done.wait [#allocation3], 128  }
   0xd   :  { %91 = vsyncadd [#allocation3], 4294967168  ;;  %v21_v0 = vld [vmem:[#allocation2] sm:$0xff]  ;;  %vm23_vm0 = vcmask 261120   ;;  %s95_s11 = smov [#allocation5]  }
   0xe   :  { %v22_v1 = vmul.f32 %v21_v0, %v21_v0  ;;  %s37_s12 = sshll.u32 %s95_s11, 4  ;;  %s38_s12 = int_to_ptr.vmem [resolvable:$true] %s37_s12 }
   0xf   :  { %s70_s13 = scalar_lea.vmem %s38_s12, 128  ;;  %p75_p6 = scmp.lt.s32.totalorder %s38_s12, %s38_s12 }
  0x10   :  { %v24_v2 = vsel %vm23_vm0, %v22_v1, 0.0  ;;  %p71_p5 = scmp.ne.s32.totalorder %s38_s12, %s70_s13  ;;  %p76_p7 = scmp.lt.s32.totalorder %s70_s13, %s70_s13 }
  0x11   :  { %25 = vadd.xlane.f32.xlu0 %v24_v2 }
  0x12   :  { %p77_p8 = por %p76_p7, %p75_p6 }
  0x14   :  { %p78_p9 = pnand %p77_p8, %p71_p5 }
  0x9a   :  { %v26_v3 = vpop.xlane.xlu0 %25 }
  0x9b   :  { %v27_v4 = vmax.f32 %v26_v3, 1e-16 }
  0x9d   :  { %48 = vrsqrt.f32 %v27_v4 }
  0xaa   :  { %v49_v5 = vpop.eup %48 }
  0xab   :  { %v29_v6 = vmul.f32 %v49_v5, %v21_v0 }
  0xad   :  { %30 = vst.msk [vmem:[#allocation5] sm:$0xff] %vm23_vm0, %v29_v6 }
  0xae   :  { %81 = shalt.err (!%p78_p9)
}
  0xaf   :  { %40 = dma.vmem_to_hbm [thread:$0]  %s38_s12, 128, %s113_s1, [#allocation4]  }
  0xb0   :  { %92 = dma.done.wait [#allocation4], 128  }
  0xb1   :  { %93 = vsyncadd [#allocation4], 4294967168 }
  0xb2   :  { %44 = vsyncpa [#allocation3], 1 }
  0xb3   :  { %45 = vsyncpa [#allocation4], 1 }

</bundles_post_ra>
